<compile_context>
chip_gen: v5e
topology: v5e:2x2
jax: 0.10.0
libtpu: 0.0.40
codegen_flags: <defaults>
</compile_context>

<pallas_src>
import functools

import jax
import jax.numpy as jnp
from jax.experimental import pallas as pl
from jax.experimental.pallas import tpu as pltpu


# ----------------------------- kernels ------------------------------------


def _gap_fused_kernel(x_ref, ch_ref, cd_ref, o_ref, *, inv_hw):
    # x_ref: (1, TC, HW); ch_ref/cd_ref: (TC, 1) f32 folded coefficients.
    x = x_ref[...].astype(jnp.float32)                       # (1, TC, HW)
    x_d = jnp.sum(x, axis=-1, keepdims=True) * inv_hw        # (1, TC, 1) f32
    ch = ch_ref[...][None, :, :]                             # fh + 1
    cd = cd_ref[...][None, :, :]                             # fd - fh - 1
    o_ref[...] = (x * ch + x_d * cd).astype(o_ref.dtype)


def _gap_mean_kernel(x_ref, mean_ref, acc_ref, *, inv_hw, hw, thw, needs_mask):
    # Pass 1 of the two-pass path: tiled spatial sum, f32 accumulator.
    k = pl.program_id(2)

    @pl.when(k == 0)
    def _init():
        acc_ref[...] = jnp.zeros_like(acc_ref)

    x = x_ref[...].astype(jnp.float32)                       # (1, TC, THW)
    if needs_mask:
        lane = jax.lax.broadcasted_iota(jnp.int32, x.shape, dimension=2)
        x = jnp.where(k * thw + lane < hw, x, 0.0)
    acc_ref[...] += jnp.sum(x, axis=-1, keepdims=True)

    @pl.when(k == pl.num_programs(2) - 1)
    def _finalize():
        mean_ref[...] = acc_ref[...] * inv_hw


def _gap_apply_kernel(x_ref, mean_ref, ch_ref, cd_ref, o_ref):
    # Pass 2 of the two-pass path: out = x*(fh+1) + mean*(fd-fh-1).
    x = x_ref[...].astype(jnp.float32)                       # (1, TC, THW)
    o_ref[...] = (x * ch_ref[...][None, :, :]
                  + mean_ref[...] * cd_ref[...][None, :, :]).astype(o_ref.dtype)


# ----------------------------- helpers ------------------------------------


def _cdiv(a, b):
    return -(-a // b)


def _round_up(v, m):
    return _cdiv(v, m) * m


def _sublane_multiple(dtype):
    # 8 for f32, 16 for bf16, 32 for int8/fp8: keeps packed sublanes unmasked.
    itemsize = jnp.dtype(dtype).itemsize
    return max(8, 8 * (4 // max(itemsize, 1)))


def _fold_coeffs(fscale_d, fscale_h, c_pad):
    # Folded, kept in f32 (bf16 pre-folding would lose precision).
    coef_h = fscale_h.astype(jnp.float32) + 1.0
    coef_d = fscale_d.astype(jnp.float32) - fscale_h.astype(jnp.float32) - 1.0
    c = coef_h.shape[0]
    if c_pad != c:
        coef_h = jnp.pad(coef_h, (0, c_pad - c))
        coef_d = jnp.pad(coef_d, (0, c_pad - c))
    return coef_h.reshape(c_pad, 1), coef_d.reshape(c_pad, 1)


def _vmem_limit(block_bytes):
    # in + out, each double-buffered, plus slack for small buffers / internals.
    return int(min(max(4 * block_bytes + (4 << 20), 16 << 20), 64 << 20))


# --------------------------- single-pass path ------------------------------


def _gap_fused(x_flat, fscale_d, fscale_h, tc):
    n, c, hw = x_flat.shape
    itemsize = jnp.dtype(x_flat.dtype).itemsize
    c_tiles = _cdiv(c, tc)
    c_pad = c_tiles * tc
    coef_h, coef_d = _fold_coeffs(fscale_d, fscale_h, c_pad)
    block_bytes = tc * hw * itemsize

    kernel = functools.partial(_gap_fused_kernel, inv_hw=float(1.0 / hw))
    return pl.pallas_call(
        kernel,
        out_shape=jax.ShapeDtypeStruct((n, c, hw), x_flat.dtype),
        grid_spec=pltpu.PrefetchScalarGridSpec(
            num_scalar_prefetch=0,
            # Channel tile on the slow axis: coefficient blocks are only
            # re-DMA'd when the channel tile changes, not every grid step.
            grid=(c_tiles, n),
            in_specs=[
                pl.BlockSpec((1, tc, hw), lambda jc, ib: (ib, jc, 0)),
                pl.BlockSpec((tc, 1), lambda jc, ib: (jc, 0)),
                pl.BlockSpec((tc, 1), lambda jc, ib: (jc, 0)),
            ],
            out_specs=pl.BlockSpec((1, tc, hw), lambda jc, ib: (ib, jc, 0)),
        ),
        compiler_params=pltpu.CompilerParams(
            dimension_semantics=("parallel", "parallel"),
            vmem_limit_bytes=_vmem_limit(block_bytes),
        ),
    )(x_flat, coef_h, coef_d)


# ---------------------------- two-pass path --------------------------------


def _gap_two_pass(x_flat, fscale_d, fscale_h, sub, target_block_bytes,
                  max_block_bytes):
    n, c, hw = x_flat.shape
    itemsize = jnp.dtype(x_flat.dtype).itemsize
    tc = sub
    budget = min(target_block_bytes, max_block_bytes)
    thw = (budget // (tc * itemsize)) // 128 * 128
    thw = max(128, min(thw, _round_up(hw, 128)))
    hw_tiles = _cdiv(hw, thw)
    needs_mask = (hw % thw) != 0
    c_tiles = _cdiv(c, tc)
    c_pad = c_tiles * tc
    coef_h, coef_d = _fold_coeffs(fscale_d, fscale_h, c_pad)
    block_bytes = tc * thw * itemsize
    vmem_limit = _vmem_limit(block_bytes)

    # Pass 1: per-(n, channel) spatial mean with f32 accumulation.
    mean_kernel = functools.partial(
        _gap_mean_kernel, inv_hw=float(1.0 / hw), hw=hw, thw=thw,
        needs_mask=needs_mask)
    means = pl.pallas_call(
        mean_kernel,
        out_shape=jax.ShapeDtypeStruct((n, c_pad, 1), jnp.float32),
        grid_spec=pltpu.PrefetchScalarGridSpec(
            num_scalar_prefetch=0,
            grid=(n, c_tiles, hw_tiles),
            in_specs=[pl.BlockSpec((1, tc, thw), lambda i, j, k: (i, j, k))],
            out_specs=pl.BlockSpec((1, tc, 1), lambda i, j, k: (i, j, 0)),
            scratch_shapes=[pltpu.VMEM((1, tc, 1), jnp.float32)],
        ),
        compiler_params=pltpu.CompilerParams(
            dimension_semantics=("parallel", "parallel", "arbitrary"),
            vmem_limit_bytes=vmem_limit,
        ),
    )(x_flat)

    # Pass 2: streamed apply of the folded coefficients, tiled over HW.
    out_flat = pl.pallas_call(
        _gap_apply_kernel,
        out_shape=jax.ShapeDtypeStruct((n, c, hw), x_flat.dtype),
        grid_spec=pltpu.PrefetchScalarGridSpec(
            num_scalar_prefetch=0,
            grid=(n, c_tiles, hw_tiles),
            in_specs=[
                pl.BlockSpec((1, tc, thw), lambda i, j, k: (i, j, k)),
                pl.BlockSpec((1, tc, 1), lambda i, j, k: (i, j, 0)),
                pl.BlockSpec((tc, 1), lambda i, j, k: (j, 0)),
                pl.BlockSpec((tc, 1), lambda i, j, k: (j, 0)),
            ],
            out_specs=pl.BlockSpec((1, tc, thw), lambda i, j, k: (i, j, k)),
        ),
        compiler_params=pltpu.CompilerParams(
            dimension_semantics=("parallel", "parallel", "parallel"),
            vmem_limit_bytes=vmem_limit,
        ),
    )(x_flat, means, coef_h, coef_d)
    return out_flat


# ------------------------------ entry point --------------------------------


def gap_forward(x, fscale_d, fscale_h, *, target_block_bytes=6 << 20,
                max_block_bytes=10 << 20):
    """x: (N, C, H, W); fscale_d, fscale_h: (C,). Returns (N, C, H, W)."""
    n, c, h, w = x.shape
    hw = h * w
    itemsize = jnp.dtype(x.dtype).itemsize
    sub = _sublane_multiple(x.dtype)
    row_bytes = hw * itemsize

    x_flat = x.reshape(n, c, hw)

    if sub * row_bytes <= max_block_bytes:
        # Single-pass: one grid step reduces and rewrites a (TC, HW) slab.
        tc = (min(target_block_bytes, max_block_bytes) // row_bytes) // sub * sub
        tc = max(sub, tc)
        tc = min(tc, _round_up(c, sub))
        # Keep enough independent grid steps for megacore sharding (v7x).
        while tc > sub and n * _cdiv(c, tc) < 8:
            tc = max(sub, (tc // 2) // sub * sub)
        out_flat = _gap_fused(x_flat, fscale_d, fscale_h, tc)
    else:
        # Even the minimum channel tile over the full row exceeds the VMEM
        # budget (huge H*W): fall back to the HW-tiled two-pass scheme.
        out_flat = _gap_two_pass(x_flat, fscale_d, fscale_h, sub,
                                 target_block_bytes, max_block_bytes)

    return out_flat.reshape(n, c, h, w)


def gap_reference(x, fscale_d, fscale_h):
    x_d = jnp.mean(x, axis=(2, 3), keepdims=True)
    x_h = (x - x_d) * (fscale_h[None, :, None, None] + 1.0)
    return x_d * fscale_d[None, :, None, None] + x_h


if __name__ == "__main__":
    key = jax.random.PRNGKey(0)
    kx, kd, kh = jax.random.split(key, 3)

    N, C, H, W = 2, 4, 16, 16
    x = jax.random.normal(kx, (N, C, H, W), dtype=jnp.float32)
    # nn.Parameter(torch.zeros(in_channel)) -> shape (C,). Use deterministic
    # non-zero values so the scaling path is actually exercised.
    fscale_d = 0.1 * jax.random.normal(kd, (C,), dtype=jnp.float32)
    fscale_h = 0.1 * jax.random.normal(kh, (C,), dtype=jnp.float32)

    out = gap_forward(x, fscale_d, fscale_h)
    out = jax.block_until_ready(out)

    ref = gap_reference(x, fscale_d, fscale_h)
    assert out.shape == (N, C, H, W)
    assert jnp.allclose(out, ref, atol=1e-5, rtol=1e-5)

    # Also validate the large-image two-pass path (forced via a tiny block
    # budget) on a shape with ragged C and ragged H*W.
    x2 = jax.random.normal(kx, (1, 5, 12, 12), dtype=jnp.float32)
    fd2 = 0.1 * jax.random.normal(kd, (5,), dtype=jnp.float32)
    fh2 = 0.1 * jax.random.normal(kh, (5,), dtype=jnp.float32)
    out2 = jax.block_until_ready(
        gap_forward(x2, fd2, fh2, target_block_bytes=4096, max_block_bytes=4096))
    ref2 = gap_reference(x2, fd2, fh2)
    assert jnp.allclose(out2, ref2, atol=1e-5, rtol=1e-5)

    print("KERNEL_OK")
</pallas_src>

<mosaic_0001>
module attributes {stable_mosaic.version = 11 : i64} {
  func.func @_gap_fused_kernel(%arg0: i32, %arg1: i32, %arg2: memref<1x8x256xf32, #tpu.memory_space<vmem>>, %arg3: memref<8x1xf32, #tpu.memory_space<vmem>>, %arg4: memref<8x1xf32, #tpu.memory_space<vmem>>, %arg5: memref<1x8x256xf32, #tpu.memory_space<vmem>>) attributes {dimension_semantics = [#tpu.dimension_semantics<parallel>, #tpu.dimension_semantics<parallel>], iteration_bounds = array<i64: 1, 2>, scalar_prefetch = 0 : i64, scratch_operands = 0 : i64, tpu.core_type = #tpu.core_type<tc>, window_params = [{transform_indices = @transform_0, window_bounds = array<i64: 1, 8, 256>}, {transform_indices = @transform_1, window_bounds = array<i64: 8, 1>}, {transform_indices = @transform_2, window_bounds = array<i64: 8, 1>}, {transform_indices = @transform_3, window_bounds = array<i64: 1, 8, 256>}]} {
    %c0 = arith.constant 0 : index
    %c0_0 = arith.constant 0 : index
    %c0_1 = arith.constant 0 : index
    %0 = vector.load %arg2[%c0, %c0_0, %c0_1] : memref<1x8x256xf32, #tpu.memory_space<vmem>>, vector<1x8x256xf32>
    %cst = arith.constant dense<0.000000e+00> : vector<1x8xf32>
    %1 = vector.multi_reduction <add>, %0, %cst [2] : vector<1x8x256xf32> to vector<1x8xf32>
    %2 = vector.shape_cast %1 : vector<1x8xf32> to vector<1x8x1xf32>
    %cst_2 = arith.constant 3.906250e-03 : f32
    %3 = vector.broadcast %cst_2 : f32 to vector<1x8x1xf32>
    %4 = arith.mulf %2, %3 : vector<1x8x1xf32>
    %c0_3 = arith.constant 0 : index
    %c0_4 = arith.constant 0 : index
    %5 = vector.load %arg3[%c0_3, %c0_4] : memref<8x1xf32, #tpu.memory_space<vmem>>, vector<8x1xf32>
    %6 = vector.shape_cast %5 : vector<8x1xf32> to vector<1x8x1xf32>
    %c0_5 = arith.constant 0 : index
    %c0_6 = arith.constant 0 : index
    %7 = vector.load %arg4[%c0_5, %c0_6] : memref<8x1xf32, #tpu.memory_space<vmem>>, vector<8x1xf32>
    %8 = vector.shape_cast %7 : vector<8x1xf32> to vector<1x8x1xf32>
    %9 = vector.broadcast %6 : vector<1x8x1xf32> to vector<1x8x256xf32>
    %10 = arith.mulf %0, %9 : vector<1x8x256xf32>
    %11 = arith.mulf %4, %8 : vector<1x8x1xf32>
    %12 = vector.broadcast %11 : vector<1x8x1xf32> to vector<1x8x256xf32>
    %13 = arith.addf %10, %12 : vector<1x8x256xf32>
    %c0_7 = arith.constant 0 : index
    %c0_8 = arith.constant 0 : index
    %c0_9 = arith.constant 0 : index
    %14 = vector.load %arg5[%c0_7, %c0_8, %c0_9] : memref<1x8x256xf32, #tpu.memory_space<vmem>>, vector<1x8x256xf32>
    tpu.vector_store %arg5[%c0_7, %c0_8, %c0_9], %13 {strides = array<i32>} : memref<1x8x256xf32, #tpu.memory_space<vmem>>, vector<1x8x256xf32>,
    return
  }
  func.func @transform_0(%arg0: i32, %arg1: i32) -> (i32, i32, i32) {
    %c0_i32 = arith.constant 0 : i32
    %c0_i32_0 = arith.constant 0 : i32
    return %arg1, %arg0, %c0_i32 : i32, i32, i32
  }
  func.func @transform_1(%arg0: i32, %arg1: i32) -> (i32, i32) {
    %c0_i32 = arith.constant 0 : i32
    %c0_i32_0 = arith.constant 0 : i32
    return %arg0, %c0_i32 : i32, i32
  }
  func.func @transform_2(%arg0: i32, %arg1: i32) -> (i32, i32) {
    %c0_i32 = arith.constant 0 : i32
    %c0_i32_0 = arith.constant 0 : i32
    return %arg0, %c0_i32 : i32, i32
  }
  func.func @transform_3(%arg0: i32, %arg1: i32) -> (i32, i32, i32) {
    %c0_i32 = arith.constant 0 : i32
    %c0_i32_0 = arith.constant 0 : i32
    return %arg1, %arg0, %c0_i32 : i32, i32, i32
  }
}

</mosaic_0001>

<bundles_post_ra>
// kernel: tpu_custom_call.1
= control target key start
LH: loop header
LB: loop body
LE: loop exit
PB: predicated region body
PF: predicated region fallthrough
CT: control target
= control target key end

     0   :  { %8 = vsyncpa [#allocation3], 0  ;;  %s724_s0 = inlined_call_operand.vmem [shape: f32[2,4,256], index: 0, kind: input, shape index: {}]   ;;  %s725_s1 = inlined_call_operand.vmem [shape: f32[8,1], index: 1, kind: input, shape index: {}]   ;;  %s726_s2 = inlined_call_operand.vmem [shape: f32[8,1], index: 2, kind: input, shape index: {}]   ;;  %s727_s3 = inlined_call_operand.hbm [shape: f32[2,4,256], index: 3, kind: output, shape index: {}]  }
   0x1   :  { %10 = vsyncpa [#allocation3 + $0x1], 0  ;;  %s623_s12 = smov 0   ;;  %s625_s13 = smov 0  }
   0x2   :  { %s627_s14 = smov 0   ;;  %s629_s15 = smov 0  }
   0x3   :  { %s631_s16 = smov 0   ;;  %s633_s17 = smov 0  }
   0x4 LB: > { %s444_s18 = sadd.s32 4294967295, %s596_s17   ;;  %s445_s19 = sadd.s32 4294967294, %s596_s17   ;;  %s596_s17 = sphi %s633_s17, %s16_s17   ;;  %s592_s16 = sphi %s631_s16, %s734_s16   ;;  %s588_s15 = sphi %s629_s15, %s733_s15   ;;  %s584_s14 = sphi %s627_s14, %s732_s14   ;;  %s580_s13 = sphi %s625_s13, %s731_s13   ;;  %s576_s12 = sphi %s623_s12, %s730_s12  }
   0x5   : > { %s25_s20 = sadd.s32 1, %s592_s16  ;;  %s117_s21 = sadd.s32 1, %s584_s14 }
   0x6   : > { %p26_p0 = scmp.ge.s32.totalorder %s25_s20, 2  ;;  %p127_p1 = scmp.ne.s32.totalorder %s584_s14, %s580_s13 }
   0x7   : > { %p128_p2 = scmp.eq.s32.totalorder %s444_s18, 1  ;;  %p133_p3 = scmp.ne.s32.totalorder %s580_s13, %s576_s12 }
   0x8   : > { %s736_s20 = smov (%p26_p0, %s25_s20), 0  ;;  %p134_p5 = scmp.eq.s32.totalorder %s445_s19, 1 }
   0x9   : > { %p663_p4 = por %p128_p2, %p127_p1  ;;  %s112_s23 = ssub.s32 %s592_s16, %s736_s20 }
   0xa   : > { %p450_p6 = scmp.ge.s32.totalorder %s596_s17, 1  ;;  %p115_p7 = scmp.eq.s32.totalorder %s112_s23, 0 }
   0xb   : > { %p670_p8 = por %p134_p5, %p133_p3  ;;  %p186_p9 = scmp.lt.s32.totalorder %s596_s17, 3 }
   0xc   : > { %s676_s25 = scalar_select %p115_p7, %s584_s14, %s117_s21  }
   0xd   : > { %p187_p10 = pnand %p450_p6, %p186_p9 }
   0xe   : > { %p230_p11 = scmp.lt.s32.totalorder (!%p187_p10), %s588_s15, 1  ;;  %s223_s6 = sand.u32 (!%p187_p10), 1, %s580_s13  }
   0xf   : > { %190 = sbr.rel (%p187_p10) target bundleno = 291 (0x123), region = 32  ;;  %s451_s9 = sshll.u32 (!%p187_p10), %s223_s6, 4 }
  0x10   : > { %s225_s10 = scalar_lea.vmem (!%p187_p10), [#allocation2], %s451_s9  ;;  %s308_s11 = scalar_lea.sflag (!%p187_p10), [#allocation3], %s223_s6 }
  0x14   : > { %s231_s26 = scalar_select %p230_p11, %s588_s15, 1  ;;  %v270_v5 = vld [vmem:[%s725_s1] sm:$0xff]  ;;  %v598_v6 = vmov 0   ;;  %v599_v11 = vmov 839922192  }
  0x15   : > { %520 = vset.pattern.permute.xlu0 %v598_v6  ;;  %521 = vset.pattern.permute.xlu1 %v598_v6  ;;  %v271_v8 = vld [vmem:[%s726_s2] sm:$0xff]  ;;  %v277_v12 = vunpack.c.l.s4 %v599_v11  ;;  %v600_v13 = vmov 1985246804  }
  0x16   : > { %s459_s27 = sshll.u32 %s231_s26, 3  ;;  %v281_v14 = vunpack.c.l.s4 %v600_v13 }
  0x17   : > { %s238_s30 = scalar_lea.vmem %s724_s0, %s459_s27  ;;  %v278_v15 = vunpack.c.0.s8 %v277_v12 }
  0x18   : > { %v255_v0 = vld [vmem:[%s238_s30] sm:$0xff]  ;;  %v256_v1 = vld [vmem:[%s238_s30 + $0x8] sm:$0xff]  ;;  %v282_v16 = vunpack.c.0.s8 %v281_v14 }
  0x19   : > { %259 = vst [vmem:[#allocation1] ss:$2 sm:$0xff] %v255_v0 }
  0x1a   : > { %261 = vst [vmem:[#allocation1 + $0x1] ss:$2 sm:$0xff] %v256_v1 }
  0x21   : > { %v262_v2 = vld.sshfl [vmem:[#allocation1] sm:$0xff pattern:$0x75316420]  ;;  %v263_v3 = vld.sshfl [vmem:[#allocation1 + $0x8] sm:$0xff pattern:$0x75316420] }
  0x22   : > { %v266_v4 = vadd.f32 %v263_v3, %v262_v2 }
  0x24   : > { %267 = vadd.xlane.f32.xlu0 %v266_v4 }
  0x38   : > { %274 = vperm.xlu0 %520, %v270_v5  }
  0x97   : > { %v268_v7 = vpop.xlane.xlu0 %267 }
  0x98   : > { %v269_v9 = vmul.f32 0.00390625, %v268_v7 }
  0x9a   : > { %v288_v10 = vmul.f32 %v271_v8, %v269_v9 }
  0x9c   : > { %291 = vperm.xlu1 %521, %v288_v10  }
  0xaa   : > { %v275_v17 = vpop.permute.xlu0 %274 }
  0xab   : > { %v279_v18 = vperm.slane %v275_v17, %v278_v15  ;;  %v283_v19 = vperm.slane %v275_v17, %v282_v16 }
  0xad   : > { %v286_v20 = vmul.f32 %v279_v18, %v255_v0  ;;  %v287_v21 = vmul.f32 %v283_v19, %v256_v1 }
 0x10e   : > { %v292_v22 = vpop.permute.xlu1 %291 }
 0x10f   : > { %v296_v23 = vperm.slane %v292_v22, %v278_v15  ;;  %v300_v24 = vperm.slane %v292_v22, %v282_v16 }
 0x110   : > { %314 = sbr.rel (!%p663_p4) target bundleno = 291 (0x123), region = 36 }
 0x111   : > { %v303_v25 = vadd.f32 %v296_v23, %v286_v20  ;;  %v304_v26 = vadd.f32 %v300_v24, %v287_v21 }
 0x113   : > { %305 = vst [vmem:[%s225_s10] sm:$0xff] %v303_v25 }
 0x114   : > { %306 = vst [vmem:[%s225_s10 + $0x8] sm:$0xff] %v304_v26 }
 0x115   : > { %321 = vsyncadd %s308_s11, 128  ;;  %s460_s18 = sshll.u32 %s588_s15, 3  ;;  %s329_s19 = sshll.u32 %s225_s10, 4  ;;  %s330_s19 = int_to_ptr.vmem [resolvable:$true] %s329_s19 }
 0x116   : > { %s327_s26 = scalar_lea.hbm %s727_s3, %s460_s18  ;;  %s538_s22 = scalar_lea.hbm %s727_s3, 16 }
 0x117   : > { %s331_s27 = sshll.u32 %s327_s26, 4  ;;  %s332_s27 = int_to_ptr.hbm [resolvable:$true] %s331_s27 }
 0x118   : > { %s534_s28 = sshra.s32 %s332_s27, 4  ;;  %s535_s28 = int_to_ptr.hbm [resolvable:$true] %s534_s28 }
 0x119   : > { %s536_s29 = scalar_lea.hbm %s535_s28, 8  ;;  %p539_p13 = scmp.lt.s32.totalorder %s535_s28, %s727_s3 }
 0x11a   : > { %p537_p12 = scmp.ne.s32.totalorder %s535_s28, %s536_s29  ;;  %p540_p0 = scmp.lt.s32.totalorder %s538_s22, %s536_s29 }
 0x11c   : > { %p541_p1 = por %p540_p0, %p539_p13 }
 0x11e   : > { %p542_p2 = pnand %p541_p1, %p537_p12 }
 0x120   : > { %545 = shalt.err (!%p542_p2)
}
 0x121   : > { %s601_s15 = smov 128   ;;  %s602_s7 = smov 8  }
 0x122   : > { %337 = dma.vmem_to_hbm [thread:$0]  %s330_s19, 128, %s332_s27, %s308_s11, %s601_s15, %s601_s15, %s602_s7  }
 0x123 PF: > { %p466_p3 = scmp.ge.s32.totalorder %s596_s17, 2  ;;  %s346_s8 = sand.u32 1, %s576_s12  }
 0x124   : > { %s347_s9 = scalar_lea.sflag [#allocation3], %s346_s8 }
 0x125   : > { %p463_p4 = pnand %p466_p3, %p670_p8 }
 0x127   : > { %p464_p5 = pneg %p463_p4 }
 0x129   : > { %571 = dma.done.wait (%p464_p5), %s347_s9, 256  }
 0x12a   : > { %573 = vsyncadd (%p464_p5), %s347_s9, 4294967040  ;;  %s16_s17 = sadd.s32 1, %s596_s17   ;;  %s730_s12 = smov %s580_s13 }
 0x12b   : > { %p13_p6 = scmp.ge.s32.totalorder %s16_s17, 4   ;;  %s731_s13 = smov %s584_s14 }
 0x12c   : > { %s732_s14 = smov %s676_s25  ;;  %s733_s15 = smov %s592_s16 }
 0x12d   : > { %s734_s16 = smov %s736_s20  ;;  %15 = sbr.rel (!%p13_p6) target bundleno = 4 (0x4), region = 74 }
 0x132   :  { %353 = vsyncpa [#allocation3], 1 }
 0x133   :  { %355 = vsyncpa [#allocation3 + $0x1], 1 }

</bundles_post_ra>
